<compile_context>
chip_gen: v7x
topology: tpu7x:2x2x1
jax: 0.10.0
libtpu: 0.0.40
codegen_flags: <defaults>
</compile_context>

<pallas_src>
import numpy as np

import jax
import jax.numpy as jnp
from jax import lax
from jax.experimental import pallas as pl
from jax.experimental.pallas import tpu as pltpu


def _make_kernel(tq, compute_dtype):
    """Build the per-(batch, query-tile) kernel body."""

    def kernel(gamma_ref,            # SMEM (1,)            f32
               x_ref,                # VMEM (C, N)          f32   (batch dim squeezed)
               wq_ref, bq_ref,       # VMEM (D, C), (D, 1)  f32
               wk_ref, bk_ref,       # VMEM (D, C), (D, 1)  f32
               wv_ref, bv_ref,       # VMEM (C, C), (C, 1)  f32
               out_ref,              # VMEM (C, TQ)
               attn_ref,             # VMEM (TQ, N)
               q_sc, k_sc, v_sc):    # VMEM (D, N), (D, N), (C, N) compute_dtype scratch
        qi = pl.program_id(1)
        cdt = compute_dtype

        # Q / K / V depend only on the batch -> project once per batch (first query
        # tile) into VMEM scratch and reuse for every query tile.
        @pl.when(qi == 0)
        def _():
            x_c = x_ref[...].astype(cdt)                                     # (C, N)
            q = jnp.dot(wq_ref[...].astype(cdt), x_c,
                        preferred_element_type=jnp.float32) + bq_ref[...]    # (D, N) f32
            k = jnp.dot(wk_ref[...].astype(cdt), x_c,
                        preferred_element_type=jnp.float32) + bk_ref[...]    # (D, N) f32
            v = jnp.dot(wv_ref[...].astype(cdt), x_c,
                        preferred_element_type=jnp.float32) + bv_ref[...]    # (C, N) f32
            q_sc[...] = q.astype(q_sc.dtype)
            k_sc[...] = k.astype(k_sc.dtype)
            v_sc[...] = v.astype(v_sc.dtype)

        # Query slab for this tile; x_tile is also the residual input.
        q_start = pl.multiple_of(qi * tq, tq)
        x_tile = x_ref[:, pl.ds(q_start, tq)]                                # (C, TQ) f32
        q_tile = q_sc[:, pl.ds(q_start, tq)]                                 # (D, TQ) cdt

        # energy[i, j] = sum_d q[d, i] * k[d, j]  -> (TQ, N)
        # contract dim 0 of q with dim 0 of k: no explicit transpose needed.
        energy = lax.dot_general(
            q_tile, k_sc[...],
            dimension_numbers=(((0,), (0,)), ((), ())),
            preferred_element_type=jnp.float32)                              # (TQ, N) f32

        # Numerically stable softmax over the key axis; all statistics in f32.
        m = jnp.max(energy, axis=-1, keepdims=True)
        e = jnp.exp(energy - m)
        denom = jnp.sum(e, axis=-1, keepdims=True)
        attn = e * pl.reciprocal(denom, approx=True)                         # (TQ, N) f32
        attn_ref[...] = attn.astype(attn_ref.dtype)

        # out[c, i] = sum_j v[c, j] * attn[i, j]  -> (C, TQ)
        # contract dim 1 of v with dim 1 of attn: again no transpose.
        o = lax.dot_general(
            v_sc[...], attn.astype(cdt),
            dimension_numbers=(((1,), (1,)), ((), ())),
            preferred_element_type=jnp.float32)                              # (C, TQ) f32

        gamma = gamma_ref[0]
        out_ref[...] = (gamma * o + 0.001 * x_tile).astype(out_ref.dtype)

    return kernel


def self_attn_res(x, params, *, tq=128, compute_dtype=jnp.float32):
    """x: (B, C, H, W) float32.  Returns (out (B, C, H, W), attention (B, N, N))."""
    B, C, H, W = x.shape
    N = H * W
    D = params["wq"].shape[0]

    if N % tq != 0:
        tq = N                      # fall back to a single query tile
    nq = N // tq

    x_flat = x.reshape(B, C, N)
    wq, bq = params["wq"], params["bq"].reshape(D, 1)
    wk, bk = params["wk"], params["bk"].reshape(D, 1)
    wv, bv = params["wv"], params["bv"].reshape(C, 1)
    gamma = params["gamma"].reshape(1).astype(jnp.float32)

    # Generous VMEM estimate (double-buffered blocks + scratch + f32 temporaries),
    # clamped so the request is always legal on v5e/v6e (128 MiB) and v7x (64 MiB).
    cbytes = jnp.dtype(compute_dtype).itemsize
    est = (2 * C * N * 4                 # resident x block
           + 2 * tq * N * 4              # attention output block (double-buffered)
           + 2 * C * tq * 4              # out block (double-buffered)
           + (2 * D + C) * N * cbytes    # q/k/v scratch
           + 4 * tq * N * 4              # in-kernel f32 temporaries (energy/e/attn)
           + 2 * (2 * D * C + C * C + 2 * D + C) * 4)   # weights/biases
    vmem_limit = int(min(max(2 * est, 32 * 2 ** 20), 64 * 2 ** 20))

    grid_spec = pltpu.PrefetchScalarGridSpec(
        num_scalar_prefetch=0,
        grid=(B, nq),
        in_specs=[
            pl.BlockSpec(memory_space=pltpu.MemorySpace.SMEM),              # gamma
            pl.BlockSpec((pl.Squeezed(), C, N), lambda b, q: (b, 0, 0)),    # x (resident per batch)
            pl.BlockSpec((D, C), lambda b, q: (0, 0)),                      # wq
            pl.BlockSpec((D, 1), lambda b, q: (0, 0)),                      # bq
            pl.BlockSpec((D, C), lambda b, q: (0, 0)),                      # wk
            pl.BlockSpec((D, 1), lambda b, q: (0, 0)),                      # bk
            pl.BlockSpec((C, C), lambda b, q: (0, 0)),                      # wv
            pl.BlockSpec((C, 1), lambda b, q: (0, 0)),                      # bv
        ],
        out_specs=[
            pl.BlockSpec((pl.Squeezed(), C, tq), lambda b, q: (b, 0, q)),   # out
            pl.BlockSpec((pl.Squeezed(), tq, N), lambda b, q: (b, q, 0)),   # attention
        ],
        scratch_shapes=[
            pltpu.VMEM((D, N), compute_dtype),                              # Q
            pltpu.VMEM((D, N), compute_dtype),                              # K
            pltpu.VMEM((C, N), compute_dtype),                              # V
        ],
    )

    out_flat, attention = pl.pallas_call(
        _make_kernel(tq, compute_dtype),
        out_shape=(
            jax.ShapeDtypeStruct((B, C, N), x.dtype),
            jax.ShapeDtypeStruct((B, N, N), jnp.float32),
        ),
        grid_spec=grid_spec,
        compiler_params=pltpu.CompilerParams(
            # batch axis is independent (megacore); query axis carries the per-batch
            # Q/K/V scratch, so it must stay sequential on one core.
            dimension_semantics=("parallel", "arbitrary"),
            vmem_limit_bytes=vmem_limit),
    )(gamma, x_flat, wq, bq, wk, bk, wv, bv)

    return out_flat.reshape(B, C, H, W), attention


def _reference(x, params):
    """Plain-JAX reference mirroring the PyTorch forward."""
    B, C, H, W = x.shape
    N = H * W
    xf = x.reshape(B, C, N)
    q = jnp.einsum("dc,bcn->bdn", params["wq"], xf) + params["bq"][None, :, None]
    k = jnp.einsum("dc,bcn->bdn", params["wk"], xf) + params["bk"][None, :, None]
    v = jnp.einsum("dc,bcn->bdn", params["wv"], xf) + params["bv"][None, :, None]
    energy = jnp.einsum("bdi,bdj->bij", q, k)
    attn = jax.nn.softmax(energy, axis=-1)
    out = jnp.einsum("bcj,bij->bci", v, attn)
    out = params["gamma"][0] * out + 0.001 * xf
    return out.reshape(B, C, H, W), attn


def init_params(key, in_dim, out_dim):
    ks = jax.random.split(key, 6)
    scale = 1.0 / np.sqrt(in_dim)
    return {
        "wq": jax.random.uniform(ks[0], (out_dim, in_dim), jnp.float32, -scale, scale),
        "bq": jax.random.uniform(ks[1], (out_dim,), jnp.float32, -scale, scale),
        "wk": jax.random.uniform(ks[2], (out_dim, in_dim), jnp.float32, -scale, scale),
        "bk": jax.random.uniform(ks[3], (out_dim,), jnp.float32, -scale, scale),
        "wv": jax.random.uniform(ks[4], (in_dim, in_dim), jnp.float32, -scale, scale),
        "bv": jax.random.uniform(ks[5], (in_dim,), jnp.float32, -scale, scale),
        "gamma": jnp.zeros((1,), jnp.float32),   # nn.Parameter(torch.zeros(1))
    }


if __name__ == "__main__":
    B, C, H, W = 2, 4, 16, 16
    out_dim = 2   # query/key projection dim

    key = jax.random.PRNGKey(0)
    kx, kp = jax.random.split(key)
    x = jax.random.normal(kx, (B, C, H, W), jnp.float32)
    params = init_params(kp, C, out_dim)
    # The module initializes gamma to 0; use a nonzero value here so the attention
    # path actually contributes to `out` and the numerical check is meaningful.
    params = dict(params, gamma=jnp.array([0.5], jnp.float32))

    out_ref_np, attn_ref_np = (np.asarray(a) for a in _reference(x, params))

    # f32 matmul path (tolerance covers the EUP approx-reciprocal in the softmax).
    out, attention = self_attn_res(x, params, tq=128, compute_dtype=jnp.float32)
    out = jax.block_until_ready(out)
    attention = jax.block_until_ready(attention)
    if not np.allclose(np.asarray(out), out_ref_np, atol=2e-3, rtol=2e-3):
        raise AssertionError("out mismatch vs reference (f32 path)")
    if not np.allclose(np.asarray(attention), attn_ref_np, atol=2e-3, rtol=2e-3):
        raise AssertionError("attention mismatch vs reference (f32 path)")

    # bf16-input / f32-accumulate MXU path (fast path on v6e/v7x); looser tolerance.
    out_b, attn_b = self_attn_res(x, params, tq=128, compute_dtype=jnp.bfloat16)
    out_b = jax.block_until_ready(out_b)
    attn_b = jax.block_until_ready(attn_b)
    if not np.allclose(np.asarray(out_b), out_ref_np, atol=5e-2, rtol=5e-2):
        raise AssertionError("out mismatch vs reference (bf16 path)")
    if not np.allclose(np.asarray(attn_b), attn_ref_np, atol=5e-2, rtol=5e-2):
        raise AssertionError("attention mismatch vs reference (bf16 path)")

    print("KERNEL_OK")
</pallas_src>

<mosaic_0001>
module attributes {stable_mosaic.version = 11 : i64} {
  func.func @kernel(%arg0: i32, %arg1: i32, %arg2: memref<1xf32, #tpu.memory_space<smem>>, %arg3: memref<1x4x256xf32, #tpu.memory_space<vmem>>, %arg4: memref<2x4xf32, #tpu.memory_space<vmem>>, %arg5: memref<2x1xf32, #tpu.memory_space<vmem>>, %arg6: memref<2x4xf32, #tpu.memory_space<vmem>>, %arg7: memref<2x1xf32, #tpu.memory_space<vmem>>, %arg8: memref<4x4xf32, #tpu.memory_space<vmem>>, %arg9: memref<4x1xf32, #tpu.memory_space<vmem>>, %arg10: memref<1x4x128xf32, #tpu.memory_space<vmem>>, %arg11: memref<1x128x256xf32, #tpu.memory_space<vmem>>, %arg12: memref<2x256xf32, #tpu.memory_space<vmem>>, %arg13: memref<2x256xf32, #tpu.memory_space<vmem>>, %arg14: memref<4x256xf32, #tpu.memory_space<vmem>>) attributes {dimension_semantics = [#tpu.dimension_semantics<parallel>, #tpu.dimension_semantics<arbitrary>], iteration_bounds = array<i64: 2, 2>, scalar_prefetch = 0 : i64, scratch_operands = 3 : i64, tpu.core_type = #tpu.core_type<tc>, window_params = [{transform_indices = @transform_0, window_bounds = array<i64: 1>}, {transform_indices = @transform_1, window_bounds = array<i64: 1, 4, 256>}, {pipeline_mode = #tpu.pipeline_mode<synchronous>, transform_indices = @transform_2, window_bounds = array<i64: 2, 4>}, {pipeline_mode = #tpu.pipeline_mode<synchronous>, transform_indices = @transform_3, window_bounds = array<i64: 2, 1>}, {pipeline_mode = #tpu.pipeline_mode<synchronous>, transform_indices = @transform_4, window_bounds = array<i64: 2, 4>}, {pipeline_mode = #tpu.pipeline_mode<synchronous>, transform_indices = @transform_5, window_bounds = array<i64: 2, 1>}, {pipeline_mode = #tpu.pipeline_mode<synchronous>, transform_indices = @transform_6, window_bounds = array<i64: 4, 4>}, {pipeline_mode = #tpu.pipeline_mode<synchronous>, transform_indices = @transform_7, window_bounds = array<i64: 4, 1>}, {transform_indices = @transform_8, window_bounds = array<i64: 1, 4, 128>}, {transform_indices = @transform_9, window_bounds = array<i64: 1, 128, 256>}]} {
    %c0_i32 = arith.constant 0 : i32
    %0 = arith.cmpi eq, %arg1, %c0_i32 : i32
    %1 = arith.extui %0 : i1 to i32
    %c0_i32_0 = arith.constant 0 : i32
    %2 = arith.cmpi ne, %1, %c0_i32_0 : i32
    scf.if %2 {
      %c0_18 = arith.constant 0 : index
      %c0_19 = arith.constant 0 : index
      %c0_20 = arith.constant 0 : index
      %36 = vector.load %arg3[%c0_18, %c0_19, %c0_20] : memref<1x4x256xf32, #tpu.memory_space<vmem>>, vector<1x4x256xf32>
      %37 = vector.shape_cast %36 : vector<1x4x256xf32> to vector<4x256xf32>
      %c0_21 = arith.constant 0 : index
      %c0_22 = arith.constant 0 : index
      %38 = vector.load %arg4[%c0_21, %c0_22] : memref<2x4xf32, #tpu.memory_space<vmem>>, vector<2x4xf32>
      %cst_23 = arith.constant dense<0.000000e+00> : vector<2x256xf32>
      %39 = tpu.matmul %38, %37, %cst_23 {dimension_numbers = #tpu.dot_dimension_numbers<[1], [0], [0], [1], [0, 0, 1, 1], [], []>} : vector<2x4xf32>, vector<4x256xf32>, vector<2x256xf32> -> vector<2x256xf32>
      %c0_24 = arith.constant 0 : index
      %c0_25 = arith.constant 0 : index
      %40 = vector.load %arg5[%c0_24, %c0_25] : memref<2x1xf32, #tpu.memory_space<vmem>>, vector<2x1xf32>
      %41 = vector.broadcast %40 : vector<2x1xf32> to vector<2x256xf32>
      %42 = arith.addf %39, %41 : vector<2x256xf32>
      %c0_26 = arith.constant 0 : index
      %c0_27 = arith.constant 0 : index
      %43 = vector.load %arg6[%c0_26, %c0_27] : memref<2x4xf32, #tpu.memory_space<vmem>>, vector<2x4xf32>
      %cst_28 = arith.constant dense<0.000000e+00> : vector<2x256xf32>
      %44 = tpu.matmul %43, %37, %cst_28 {dimension_numbers = #tpu.dot_dimension_numbers<[1], [0], [0], [1], [0, 0, 1, 1], [], []>} : vector<2x4xf32>, vector<4x256xf32>, vector<2x256xf32> -> vector<2x256xf32>
      %c0_29 = arith.constant 0 : index
      %c0_30 = arith.constant 0 : index
      %45 = vector.load %arg7[%c0_29, %c0_30] : memref<2x1xf32, #tpu.memory_space<vmem>>, vector<2x1xf32>
      %46 = vector.broadcast %45 : vector<2x1xf32> to vector<2x256xf32>
      %47 = arith.addf %44, %46 : vector<2x256xf32>
      %c0_31 = arith.constant 0 : index
      %c0_32 = arith.constant 0 : index
      %48 = vector.load %arg8[%c0_31, %c0_32] : memref<4x4xf32, #tpu.memory_space<vmem>>, vector<4x4xf32>
      %cst_33 = arith.constant dense<0.000000e+00> : vector<4x256xf32>
      %49 = tpu.matmul %48, %37, %cst_33 {dimension_numbers = #tpu.dot_dimension_numbers<[1], [0], [0], [1], [0, 0, 1, 1], [], []>} : vector<4x4xf32>, vector<4x256xf32>, vector<4x256xf32> -> vector<4x256xf32>
      %c0_34 = arith.constant 0 : index
      %c0_35 = arith.constant 0 : index
      %50 = vector.load %arg9[%c0_34, %c0_35] : memref<4x1xf32, #tpu.memory_space<vmem>>, vector<4x1xf32>
      %51 = vector.broadcast %50 : vector<4x1xf32> to vector<4x256xf32>
      %52 = arith.addf %49, %51 : vector<4x256xf32>
      %c0_36 = arith.constant 0 : index
      %c0_37 = arith.constant 0 : index
      %53 = vector.load %arg12[%c0_36, %c0_37] : memref<2x256xf32, #tpu.memory_space<vmem>>, vector<2x256xf32>
      tpu.vector_store %arg12[%c0_36, %c0_37], %42 {strides = array<i32>} : memref<2x256xf32, #tpu.memory_space<vmem>>, vector<2x256xf32>,
      %c0_38 = arith.constant 0 : index
      %c0_39 = arith.constant 0 : index
      %54 = vector.load %arg13[%c0_38, %c0_39] : memref<2x256xf32, #tpu.memory_space<vmem>>, vector<2x256xf32>
      tpu.vector_store %arg13[%c0_38, %c0_39], %47 {strides = array<i32>} : memref<2x256xf32, #tpu.memory_space<vmem>>, vector<2x256xf32>,
      %c0_40 = arith.constant 0 : index
      %c0_41 = arith.constant 0 : index
      %55 = vector.load %arg14[%c0_40, %c0_41] : memref<4x256xf32, #tpu.memory_space<vmem>>, vector<4x256xf32>
      tpu.vector_store %arg14[%c0_40, %c0_41], %52 {strides = array<i32>} : memref<4x256xf32, #tpu.memory_space<vmem>>, vector<4x256xf32>,
    } else {
    }
    %c128_i32 = arith.constant 128 : i32
    %3 = arith.muli %arg1, %c128_i32 : i32
    %4 = tpu.assume_multiple %3, 128 : i32
    %c0 = arith.constant 0 : index
    %c0_1 = arith.constant 0 : index
    %5 = arith.index_cast %4 : i32 to index
    %6 = vector.load %arg3[%c0, %c0_1, %5] : memref<1x4x256xf32, #tpu.memory_space<vmem>>, vector<1x4x128xf32>
    %7 = vector.shape_cast %6 : vector<1x4x128xf32> to vector<4x128xf32>
    %c0_2 = arith.constant 0 : index
    %8 = arith.index_cast %4 : i32 to index
    %9 = vector.load %arg12[%c0_2, %8] : memref<2x256xf32, #tpu.memory_space<vmem>>, vector<2x128xf32>
    %c0_3 = arith.constant 0 : index
    %c0_4 = arith.constant 0 : index
    %10 = vector.load %arg13[%c0_3, %c0_4] : memref<2x256xf32, #tpu.memory_space<vmem>>, vector<2x256xf32>
    %cst = arith.constant dense<0.000000e+00> : vector<128x256xf32>
    %11 = tpu.matmul %9, %10, %cst {dimension_numbers = #tpu.dot_dimension_numbers<[0], [0], [1], [1], [0, 1, 1, 1], [], []>} : vector<2x128xf32>, vector<2x256xf32>, vector<128x256xf32> -> vector<128x256xf32>
    %cst_5 = arith.constant dense<0xFF800000> : vector<128xf32>
    %12 = vector.multi_reduction <maximumf>, %11, %cst_5 [1] : vector<128x256xf32> to vector<128xf32>
    %13 = vector.shape_cast %12 : vector<128xf32> to vector<128x1xf32>
    %14 = vector.broadcast %13 : vector<128x1xf32> to vector<128x256xf32>
    %15 = arith.subf %11, %14 : vector<128x256xf32>
    %16 = math.exp %15 : vector<128x256xf32>
    %cst_6 = arith.constant dense<0.000000e+00> : vector<128xf32>
    %17 = vector.multi_reduction <add>, %16, %cst_6 [1] : vector<128x256xf32> to vector<128xf32>
    %18 = vector.shape_cast %17 : vector<128xf32> to vector<128x1xf32>
    %19 = tpu.reciprocal %18 {approx = true} : vector<128x1xf32> -> vector<128x1xf32>
    %20 = vector.broadcast %19 : vector<128x1xf32> to vector<128x256xf32>
    %21 = arith.mulf %16, %20 : vector<128x256xf32>
    %c0_7 = arith.constant 0 : index
    %c0_8 = arith.constant 0 : index
    %c0_9 = arith.constant 0 : index
    %22 = vector.load %arg11[%c0_7, %c0_8, %c0_9] : memref<1x128x256xf32, #tpu.memory_space<vmem>>, vector<1x128x256xf32>
    %23 = vector.shape_cast %22 : vector<1x128x256xf32> to vector<128x256xf32>
    %24 = vector.shape_cast %21 : vector<128x256xf32> to vector<1x128x256xf32>
    tpu.vector_store %arg11[%c0_7, %c0_8, %c0_9], %24 {strides = array<i32>} : memref<1x128x256xf32, #tpu.memory_space<vmem>>, vector<1x128x256xf32>,
    %c0_10 = arith.constant 0 : index
    %c0_11 = arith.constant 0 : index
    %25 = vector.load %arg14[%c0_10, %c0_11] : memref<4x256xf32, #tpu.memory_space<vmem>>, vector<4x256xf32>
    %cst_12 = arith.constant dense<0.000000e+00> : vector<4x128xf32>
    %26 = tpu.matmul %25, %21, %cst_12 {dimension_numbers = #tpu.dot_dimension_numbers<[1], [1], [0], [0], [0, 0, 1, 0], [], []>} : vector<4x256xf32>, vector<128x256xf32>, vector<4x128xf32> -> vector<4x128xf32>
    %c0_13 = arith.constant 0 : index
    %27 = memref.load %arg2[%c0_13] : memref<1xf32, #tpu.memory_space<smem>>
    %28 = vector.broadcast %27 : f32 to vector<4x128xf32>
    %29 = arith.mulf %28, %26 : vector<4x128xf32>
    %cst_14 = arith.constant 1.000000e-03 : f32
    %30 = vector.broadcast %cst_14 : f32 to vector<4x128xf32>
    %31 = arith.mulf %30, %7 : vector<4x128xf32>
    %32 = arith.addf %29, %31 : vector<4x128xf32>
    %c0_15 = arith.constant 0 : index
    %c0_16 = arith.constant 0 : index
    %c0_17 = arith.constant 0 : index
    %33 = vector.load %arg10[%c0_15, %c0_16, %c0_17] : memref<1x4x128xf32, #tpu.memory_space<vmem>>, vector<1x4x128xf32>
    %34 = vector.shape_cast %33 : vector<1x4x128xf32> to vector<4x128xf32>
    %35 = vector.shape_cast %32 : vector<4x128xf32> to vector<1x4x128xf32>
    tpu.vector_store %arg10[%c0_15, %c0_16, %c0_17], %35 {strides = array<i32>} : memref<1x4x128xf32, #tpu.memory_space<vmem>>, vector<1x4x128xf32>,
    return
  }
  func.func @transform_0(%arg0: i32, %arg1: i32) -> i32 {
    %c0_i32 = arith.constant 0 : i32
    %c0_i32_0 = arith.constant 0 : i32
    return %c0_i32 : i32
  }
  func.func @transform_1(%arg0: i32, %arg1: i32) -> (i32, i32, i32) {
    %c0_i32 = arith.constant 0 : i32
    %c0_i32_0 = arith.constant 0 : i32
    %c0_i32_1 = arith.constant 0 : i32
    return %arg0, %c0_i32, %c0_i32_0 : i32, i32, i32
  }
  func.func @transform_2(%arg0: i32, %arg1: i32) -> (i32, i32) {
    %c0_i32 = arith.constant 0 : i32
    %c0_i32_0 = arith.constant 0 : i32
    %c0_i32_1 = arith.constant 0 : i32
    return %c0_i32, %c0_i32_0 : i32, i32
  }
  func.func @transform_3(%arg0: i32, %arg1: i32) -> (i32, i32) {
    %c0_i32 = arith.constant 0 : i32
    %c0_i32_0 = arith.constant 0 : i32
    %c0_i32_1 = arith.constant 0 : i32
    return %c0_i32, %c0_i32_0 : i32, i32
  }
  func.func @transform_4(%arg0: i32, %arg1: i32) -> (i32, i32) {
    %c0_i32 = arith.constant 0 : i32
    %c0_i32_0 = arith.constant 0 : i32
    %c0_i32_1 = arith.constant 0 : i32
    return %c0_i32, %c0_i32_0 : i32, i32
  }
  func.func @transform_5(%arg0: i32, %arg1: i32) -> (i32, i32) {
    %c0_i32 = arith.constant 0 : i32
    %c0_i32_0 = arith.constant 0 : i32
    %c0_i32_1 = arith.constant 0 : i32
    return %c0_i32, %c0_i32_0 : i32, i32
  }
  func.func @transform_6(%arg0: i32, %arg1: i32) -> (i32, i32) {
    %c0_i32 = arith.constant 0 : i32
    %c0_i32_0 = arith.constant 0 : i32
    %c0_i32_1 = arith.constant 0 : i32
    return %c0_i32, %c0_i32_0 : i32, i32
  }
  func.func @transform_7(%arg0: i32, %arg1: i32) -> (i32, i32) {
    %c0_i32 = arith.constant 0 : i32
    %c0_i32_0 = arith.constant 0 : i32
    %c0_i32_1 = arith.constant 0 : i32
    return %c0_i32, %c0_i32_0 : i32, i32
  }
  func.func @transform_8(%arg0: i32, %arg1: i32) -> (i32, i32, i32) {
    %c0_i32 = arith.constant 0 : i32
    %c0_i32_0 = arith.constant 0 : i32
    return %arg0, %c0_i32, %arg1 : i32, i32, i32
  }
  func.func @transform_9(%arg0: i32, %arg1: i32) -> (i32, i32, i32) {
    %c0_i32 = arith.constant 0 : i32
    %c0_i32_0 = arith.constant 0 : i32
    return %arg0, %arg1, %c0_i32 : i32, i32, i32
  }
}

</mosaic_0001>

<bundles_post_ra>
// kernel: tpu_custom_call.1
= control target key start
LH: loop header
LB: loop body
LE: loop exit
PB: predicated region body
PF: predicated region fallthrough
CT: control target
= control target key end

     0   :  { %s2502_s0 = inlined_call_operand.<no memory space> [shape: f32[1], index: 0, kind: input, shape index: {}]   ;;  %s2503_s1 = inlined_call_operand.vmem [shape: f32[2,4,256], index: 1, kind: input, shape index: {}]   ;;  %s2504_s2 = inlined_call_operand.hbm [shape: f32[2,4], index: 2, kind: input, shape index: {}]   ;;  %s2505_s3 = inlined_call_operand.vmem [shape: f32[2,1], index: 3, kind: input, shape index: {}]   ;;  %s2506_s4 = inlined_call_operand.vmem [shape: f32[2,4], index: 4, kind: input, shape index: {}]   ;;  %s2507_s5 = inlined_call_operand.vmem [shape: f32[2,1], index: 5, kind: input, shape index: {}]   ;;  %s2508_s6 = inlined_call_operand.vmem [shape: f32[4,4], index: 6, kind: input, shape index: {}]   ;;  %s2509_s7 = inlined_call_operand.vmem [shape: f32[4,1], index: 7, kind: input, shape index: {}]   ;;  %s2510_s8 = inlined_call_operand.hbm [shape: f32[2,4,256], index: 8, kind: output, shape index: {0}]   ;;  %s2511_s9 = inlined_call_operand.hbm [shape: f32[2,256,256], index: 9, kind: output, shape index: {1}]  }
   0x1   :  { %2519 = sst [smem:[#allocation18_spill]] %s2503_s1 }
   0x2   :  { %2520 = sst [smem:[#allocation19_spill]] %s2504_s2 }
   0x3   :  { %2521 = sst [smem:[#allocation20_spill]] %s2505_s3 }
   0x4   :  { %2522 = sst [smem:[#allocation21_spill]] %s2506_s4 }
   0x5   :  { %2523 = sst [smem:[#allocation22_spill]] %s2507_s5 }
   0x6   :  { %2524 = sst [smem:[#allocation23_spill]] %s2508_s6 }
   0x7   :  { %15 = sst [smem:[#allocation5]] %s2502_s0 }
   0x8   :  { %16 = vsyncpa [#allocation7], 0 }
   0x9   :  { %17 = vsyncpa [#allocation8], 0 }
   0xa   :  { %19 = vsyncpa [#allocation8 + $0x1], 0 }
   0xb   :  { %20 = vsyncpa [#allocation11], 0 }
   0xc   :  { %22 = vsyncpa [#allocation11 + $0x1], 0  ;;  %s1941_s11 = smov 0   ;;  %s1943_s12 = smov 0  }
   0xd   :  { %s1945_s13 = smov 0   ;;  %s1947_s14 = smov 0  }
   0xe   :  { %s1949_s15 = smov 0   ;;  %s1951_s16 = smov 0  }
   0xf   :  { %s1953_s17 = smov 0   ;;  %s1955_s0 = smov 0  }
  0x10 LB: > { %2525 = sst [smem:[#allocation15_spill]] %s1874_s17  ;;  %s1439_s18 = sadd.s32 4294967295, %s1878_s0   ;;  %s1878_s0 = sphi %s1955_s0, %s28_s0   ;;  %s1874_s17 = sphi %s1953_s17, %s2545_s17   ;;  %s1870_s16 = sphi %s1951_s16, %s2550_s16   ;;  %s1866_s15 = sphi %s1949_s15, %s2543_s15   ;;  %s1862_s14 = sphi %s1947_s14, %s2549_s14   ;;  %s1858_s13 = sphi %s1945_s13, %s2548_s13   ;;  %s1854_s12 = sphi %s1943_s12, %s2547_s12   ;;  %s1850_s11 = sphi %s1941_s11, %s2546_s11  }
  0x11   : > { %s1440_s19 = sadd.s32 4294967294, %s1878_s0   ;;  %s37_s20 = sadd.s32 1, %s1870_s16 }
  0x12   : > { %s40_s21 = sadd.s32 1, %s1874_s17  ;;  %p38_p0 = scmp.ge.s32.totalorder %s37_s20, 2 }
  0x13   : > { %s222_s22 = sadd.s32 1, %s1858_s13  ;;  %p232_p1 = scmp.ne.s32.totalorder %s1858_s13, %s1854_s12 }
  0x14   : > { %p233_p2 = scmp.eq.s32.totalorder %s1439_s18, 3  ;;  %s2552_s20 = smov (%p38_p0, %s37_s20), 0 }
  0x15   : > { %2526 = sst [smem:[#allocation16_spill]] %s2552_s20  ;;  %s2554_s21 = smov (!%p38_p0, %s40_s21), %s1874_s17 }
  0x16   : > { %s218_s23 = ssub.s32 %s1870_s16, %s2552_s20  ;;  %p1993_p3 = por %p233_p2, %p232_p1 }
  0x17   : > { %p42_p4 = scmp.ge.s32.totalorder %s2554_s21, 2  ;;  %p238_p5 = scmp.ne.s32.totalorder %s1854_s12, %s1850_s11 }
  0x18   : > { %s2527_s24 = scalar_select %p1993_p3, 1, 0 }
  0x19   : > { %p239_p6 = scmp.eq.s32.totalorder %s1440_s19, 3  ;;  %p1441_p7 = scmp.ge.s32.totalorder %s1878_s0, 1 }
  0x1a   : > { %s2556_s21 = smov (%p42_p4, %s2554_s21), 0  ;;  %p274_p9 = scmp.lt.s32.totalorder %s1878_s0, 5 }
  0x1b   : > { %2528 = sst [smem:[#allocation17_spill]] %s2556_s21  ;;  %p2002_p8 = por %p239_p6, %p238_p5 }
  0x1c   : > { %s217_s26 = ssub.s32 %s1874_s17, %s2556_s21  ;;  %p2009_p10 = pnand %p1441_p7, %p274_p9 }
  0x1d   : > { %s2529_s25 = scalar_select %p2002_p8, 1, 0 }
  0x1e   : > { %s219_s27 = sor.u32 %s218_s23, %s217_s26  ;;  %p2013_p12 = scmp.eq.s32.totalorder %s1439_s18, 0 }
  0x1f   : > { %s2530_s28 = scalar_select %p2009_p10, 1, 0 }
  0x20   : > { %p220_p11 = scmp.eq.s32.totalorder %s219_s27, 0  ;;  %p1536_p13 = pneg %p2009_p10 }
  0x21   : > { %s2531_s29 = scalar_select %p2013_p12, 1, 0 }
  0x22   : > { %s2020_s30 = scalar_select %p220_p11, %s1858_s13, %s222_s22  }
  0x23   : > { %s1880_s10 = smov [#allocation6]   ;;  %p2024_p0 = pnand %p2013_p12, %p1536_p13 }
  0x24   : > { %s290_s19 = sshll.u32 %s1880_s10, 4  ;;  %s2533_s2 = sld [smem:[#allocation19_spill]]  ;;  %s291_s19 = int_to_ptr.vmem [resolvable:$true] %s290_s19 }
  0x25   : > { %p1722_p2 = pneg %p2024_p0 }
  0x2a   : > { %s1720_s18 = scalar_lea.hbm %s2533_s2, 32 }
  0x2b   : > { %p1721_p1 = scmp.ne.s32.totalorder %s2533_s2, %s1720_s18  ;;  %p1727_p6 = scmp.lt.u32.totalorder %s1720_s18, %s2533_s2 }
  0x2d   : > { %p1723_p4 = pnand %p1722_p2, %p1721_p1 }
  0x2f   : > { %p1724_p5 = pneg %p1723_p4 }
  0x31   : > { %p1729_p7 = pnand %p1727_p6, %p1724_p5 }
  0x33   : > { %1732 = shalt.err (!%p1729_p7)
}
  0x34   : > { %s1733_s17 = scalar_lea.vmem %s291_s19, 32  ;;  %p1741_p8 = scmp.lt.s32.totalorder %s291_s19, %s291_s19 }
  0x35   : > { %p1734_p9 = scmp.ne.s32.totalorder %s291_s19, %s1733_s17  ;;  %p1742_p3 = scmp.lt.s32.totalorder %s1733_s17, %s1733_s17 }
  0x37   : > { %p1736_p11 = pnand %p1734_p9, %p1722_p2  ;;  %p1743_p12 = por %p1742_p3, %p1741_p8 }
  0x39   : > { %p1737_p13 = pneg %p1736_p11 }
  0x3b   : > { %p1744_p10 = pnand %p1743_p12, %p1737_p13 }
  0x3d   : > { %1747 = shalt.err (!%p1744_p10)
}
  0x3e   : > { %1539 = dma.hbm_to_vmem [thread:$0]  (!%p2024_p0), %s2533_s2, 32, %s291_s19, [#allocation7]  }
  0x3f   : > { %p2534_p1 = scmp.ne.s32.totalorder %s2530_s28, 0 }
  0x40   : > { %p2535_p4 = scmp.ne.s32.totalorder (!%p2534_p1), %s2531_s29, 0 }
  0x41   : > { %326 = sbr.rel (%p2534_p1) target bundleno = 1274 (0x4fa), region = 52 }
  0x48   : > { %1837 = dma.done.wait (%p2535_p4), [#allocation7], 32  }
  0x49   : > { %1839 = vsyncadd (%p2535_p4), [#allocation7], 4294967264  ;;  %s2051_s17 = sand.u32 1, %s1854_s12   ;;  %p367_p3 = scmp.lt.s32.totalorder %s1866_s15, 1 }
  0x4a   : > { %s1446_s23 = sshll.u32 %s2051_s17, 2  ;;  %s1447_s26 = sshll.u32 %s2051_s17, 8 }
  0x4b   : > { %s368_s19 = scalar_select %p367_p3, %s1866_s15, 1 }
  0x4c   : > { %s2536_s1 = sld [smem:[#allocation18_spill]]  ;;  %s2062_s10 = scalar_lea.vmem [#allocation9], %s1446_s23 }
  0x4d   : > { %s1494_s27 = sshll.u32 %s368_s19, 3  ;;  %s2064_s29 = scalar_lea.vmem [#allocation10], %s1447_s26 }
  0x4e   : > { %p1450_p8 = scmp.ne.s32.totalorder %s1862_s14, 0 }
  0x4f   : > { %vm391_vm0 = vcmask (!%p1450_p8), 1043456   ;;  %v1881_v2 = vmov (!%p1450_p8), 0.0   ;;  %v378_v3 = vld [vmem:[#allocation6] sm:$0x3] (!%p1450_p8)  ;;  %vm387_vm1 = vcmask (!%p1450_p8), 31744   ;;  %v1882_v4 = vmov (!%p1450_p8), 0  }
  0x50   : > { %376 = sbr.rel (%p1450_p8) target bundleno = 310 (0x136), region = 60  ;;  %460 = vmatprep.mubr.f32.mxu0 (!%p1450_p8), %v1881_v2  ;;  %541 = vmatprep.mubr.f32.mxu1 (!%p1450_p8), %v1881_v2  ;;  %s2537_s4 = sld [smem:[#allocation21_spill]] (!%p1450_p8)  ;;  %v549_v7 = vld [vmem:[%s2509_s7] sm:$0xf] (!%p1450_p8) }
  0x51   : > { %1620 = vset.pattern.permute.xlu0 (!%p1450_p8), %v1882_v4  ;;  %1621 = vset.pattern.permute.xlu1 (!%p1450_p8), %v1882_v4  ;;  %s2538_s3 = sld [smem:[#allocation20_spill]] (!%p1450_p8)  ;;  %s2539_s6 = sld [smem:[#allocation23_spill]] (!%p1450_p8) }
  0x52   : > { %s2060_s22 = scalar_lea.vmem %s2536_s1, %s1494_s27  ;;  %s2540_s5 = sld [smem:[#allocation22_spill]] (!%p1450_p8)  ;;  %552 = vperm.xlu1 (!%p1450_p8), %1621, %v549_v7  }
  0x53   : > { %v377_v0 = vld [vmem:[%s2060_s22] sm:$0xff] (!%p1450_p8) }
  0x54   : > { %v386_v1 = vcombine.high (!%p1450_p8), %v377_v0, %v377_v0 }
  0x56   : > { %1451 = vmatprep.subr.msk.mxu0 (!%p1450_p8), %vm391_vm0, %v386_v1  ;;  %1454 = vmatprep.subr.msk.mxu1 (!%p1450_p8), %vm391_vm0, %v386_v1  ;;  %v467_v5 = vld [vmem:[%s2537_s4] sm:$0x3] (!%p1450_p8) }
  0x57   : > { %1452 = vmatpush1.msk.msra.mxu0 %vm391_vm0, %v377_v0  ;;  %1455 = vmatpush1.msk.msra.mxu1 %vm391_vm0, %v377_v0  ;;  %v379_v6 = vld [vmem:[%s2538_s3] sm:$0x3] }
  0x58   : > { %1453 = vmatmul.mubr.msk.f32.vlgmr.msra.gmra.mrb[0].mxu0 %vm387_vm1, %v378_v3  ;;  %1457 = vmatprep.subr.msk.mxu0 %vm391_vm0, %v386_v1  ;;  %v548_v8 = vld [vmem:[%s2539_s6] sm:$0xf] }
  0x59   : > { %1456 = vmatmul.mubr.msk.f32.vlgmr.msra.gmra.mrb[0].mxu1 %vm387_vm1, %v467_v5  ;;  %1458 = vmatpush1.msk.msra.mxu0 %vm391_vm0, %v377_v0  ;;  %v468_v9 = vld [vmem:[%s2540_s5] sm:$0x3] }
  0x5a   : > { %622 = vmatprep.mubr.f32.mxu0 %v1881_v2  ;;  %382 = vperm.xlu0 %1620, %v379_v6  }
  0x5c   : > { %1459 = vmatmul.mubr.msk.f32.vlgmr.msra.gmra.mrb[2].mxu0 %vm387_vm1, %v548_v8 }
  0x5e   : > { %471 = vperm.xlu0 %1620, %v468_v9  }
  0xd1   : > { %v553_v19 = vpop.permute.xlu1 %552 }
  0xd9   : > { %v383_v10 = vpop.permute.xlu0 %382 }
  0xdd   : > { %v472_v11 = vpop.permute.xlu0 %471 }
 0x12b   : > { %v462_v12 = vpop.f32.mrb[0].mxu0 }
 0x12c   : > { %v463_v13 = vadd.f32 %v462_v12, %v383_v10  ;;  %v464_v14 = vpop.f32.mrb[1].mxu0  ;;  %v543_v15 = vpop.f32.mrb[0].mxu1 }
 0x12d   : > { %v465_v16 = vadd.f32 %v464_v14, %v383_v10  ;;  %v544_v17 = vadd.f32 %v543_v15, %v472_v11  ;;  %v545_v18 = vpop.f32.mrb[1].mxu1 }
 0x12e   : > { %v546_v20 = vadd.f32 %v545_v18, %v472_v11 }
 0x12f   : > { %v631_v21 = vcombine.low %v463_v13, %v465_v16  ;;  %v624_v22 = vpop.f32.mrb[2].mxu0 }
 0x130   : > { %v643_v23 = vcombine.low %v544_v17, %v546_v20  ;;  %v625_v24 = vadd.f32 %v624_v22, %v553_v19  ;;  %v626_v25 = vpop.f32.mrb[3].mxu0 }
 0x131   : > { %1460 = vst.sshfl [vmem:[#allocation2] sm:$0x33 pattern:$0x76325410] %v631_v21  ;;  %v627_v26 = vadd.f32 %v626_v25, %v553_v19 }
 0x132   : > { %1461 = vst.sshfl [vmem:[#allocation3] sm:$0x33 pattern:$0x76325410] %v643_v23 }
 0x133   : > { %v655_v27 = vcombine.low %v625_v24, %v627_v26 }
 0x135   : > { %657 = vst [vmem:[#allocation4] sm:$0xff] %v655_v27 }
 0x136 PF: > { %s1462_s23 = sshll.u32 %s1862_s14, 7  ;;  %vm758_vm2 = vcmask 1041408   ;;  %v1883_v30 = vmov 0.0   ;;  %vm709_vm3 = vcmask 15360   ;;  %s1495_s28 = sshll.u32 %s1862_s14, 5 }
 0x137   : > { %s2093_s26 = sshra.s32 %s1462_s23, 7  ;;  %827 = vmatprep.mubr.f32.mxu0 %v1883_v30  ;;  %s1490_s18 = sshll.u32 %s1866_s15, 6 }
 0x138   : > { %s1464_s19 = sshll.u32 %s2093_s26, 1  ;;  %s1310_s20 = sadd.s32 %s1495_s28, %s1490_s18 }
 0x139   : > { %v1465_v28 = vld.sshfl [vmem:[#allocation3] sm:$0x33 pattern:$0x76325410]  ;;  %s665_s27 = scalar_lea.vmem [#allocation2], %s1464_s19  ;;  %s1313_s21 = sshll.u32 %s2064_s29, 4  ;;  %s2408_s21 = int_to_ptr.vmem [resolvable:$true] %s1313_s21 }
 0x13a   : > { %v708_v29 = vcombine.high %v1465_v28, %v1465_v28  ;;  %v666_v31 = vld [vmem:[%s665_s27] sm:$0x3]  ;;  %s1491_s23 = sshll.u32 %s1310_s20, 7  ;;  %s1282_s2 = scalar_lea.sflag [#allocation11], %s2051_s17 }
 0x13b   : > { %668 = vxpose.xlu0.b32.start.end [1/1] (short) %v666_v31, 128  ;;  %s2413_s1 = scalar_lea.hbm %s2511_s9, %s1491_s23  ;;  %s1748_s3 = scalar_lea.vmem %s2408_s21, 4096 }
 0x13c   : > { %1466 = vmatprep.subr.msk.mxu0 %vm758_vm2, %v708_v29  ;;  %p1749_p10 = scmp.ne.s32.totalorder %s2408_s21, %s1748_s3  ;;  %p2541_p12 = scmp.ne.s32.totalorder %s2527_s24, 0 }
 0x13d   : > { %1467 = vmatpush1.msk.msra.mxu0 %vm758_vm2, %v1465_v28  ;;  %s1884_s4 = smov [#allocation10]  }
 0x13e   : > { %p1750_p0 = pnand %p1749_p10, %p2541_p12  ;;  %s1752_s28 = sshll.u32 %s1884_s4, 4  ;;  %s1753_s28 = int_to_ptr.vmem [resolvable:$false] %s1752_s28 }
 0x13f   : > { %p1755_p5 = scmp.lt.s32.totalorder %s2408_s21, %s1753_s28 }
 0x140   : > { %p1751_p2 = pneg %p1750_p0 }
 0x1bb   : > { %v684_v32 = vpop.trf.xlu0 }
 0x1bc   : > { %1468 = vmatmul.mubr.msk.f32.vlgmr.msra.gmra.mrb[0].mxu0 %vm709_vm3, %v684_v32 }
 0x1bd   : > { %833 = vmatprep.mubr.f32.mxu0 %v1883_v30 }
 0x1bf   : > { %v685_v33 = vpop.trf.xlu0 }
 0x1c0   : > { %1469 = vmatmul.mubr.msk.f32.gmra.mrb[2].mxu0 %vm709_vm3, %v685_v33 }
 0x1c1   : > { %839 = vmatprep.mubr.f32.mxu0 %v1883_v30 }
 0x1c3   : > { %v686_v34 = vpop.trf.xlu0 }
 0x1c4   : > { %1470 = vmatmul.mubr.msk.f32.gmra.mrb[4].mxu0 %vm709_vm3, %v686_v34 }
 0x1c5   : > { %845 = vmatprep.mubr.f32.mxu0 %v1883_v30 }
 0x1c7   : > { %v687_v35 = vpop.trf.xlu0 }
 0x1c8   : > { %1471 = vmatmul.mubr.msk.f32.gmra.mrb[6].mxu0 %vm709_vm3, %v687_v35 }
 0x1c9   : > { %851 = vmatprep.mubr.f32.mxu0 %v1883_v30 }
 0x1cb   : > { %v688_v36 = vpop.trf.xlu0 }
 0x1cc   : > { %1472 = vmatmul.mubr.msk.f32.gmra.mrb[8].mxu0 %vm709_vm3, %v688_v36 }
 0x1cd   : > { %857 = vmatprep.mubr.f32.mxu0 %v1883_v30 }
 0x1cf   : > { %v689_v37 = vpop.trf.xlu0 }
 0x1d0   : > { %1473 = vmatmul.mubr.msk.f32.gmra.mrb[10].mxu0 %vm709_vm3, %v689_v37 }
 0x1d1   : > { %863 = vmatprep.mubr.f32.mxu0 %v1883_v30 }
 0x1d3   : > { %v690_v38 = vpop.trf.xlu0 }
 0x1d4   : > { %1474 = vmatmul.mubr.msk.f32.gmra.mrb[12].mxu0 %vm709_vm3, %v690_v38 }
 0x1d5   : > { %869 = vmatprep.mubr.f32.mxu0 %v1883_v30 }
 0x1d7   : > { %v691_v39 = vpop.trf.xlu0 }
 0x1d8   : > { %1475 = vmatmul.mubr.msk.f32.gmra.mrb[14].mxu0 %vm709_vm3, %v691_v39 }
 0x1d9   : > { %875 = vmatprep.mubr.f32.mxu0 %v1883_v30 }
 0x1db   : > { %v692_v40 = vpop.trf.xlu0 }
 0x1dc   : > { %1476 = vmatmul.mubr.msk.f32.gmra.mrb[16].mxu0 %vm709_vm3, %v692_v40 }
 0x1dd   : > { %881 = vmatprep.mubr.f32.mxu0 %v1883_v30 }
 0x1df   : > { %v693_v41 = vpop.trf.xlu0 }
 0x1e0   : > { %1477 = vmatmul.mubr.msk.f32.gmra.mrb[18].mxu0 %vm709_vm3, %v693_v41 }
 0x1e1   : > { %887 = vmatprep.mubr.f32.mxu0 %v1883_v30 }
 0x1e3   : > { %v694_v42 = vpop.trf.xlu0 }
 0x1e4   : > { %1478 = vmatmul.mubr.msk.f32.gmra.mrb[20].mxu0 %vm709_vm3, %v694_v42 }
 0x1e5   : > { %893 = vmatprep.mubr.f32.mxu0 %v1883_v30 }
 0x1e7   : > { %v695_v43 = vpop.trf.xlu0 }
 0x1e8   : > { %1479 = vmatmul.mubr.msk.f32.gmra.mrb[22].mxu0 %vm709_vm3, %v695_v43 }
 0x1e9   : > { %899 = vmatprep.mubr.f32.mxu0 %v1883_v30 }
 0x1eb   : > { %v696_v44 = vpop.trf.xlu0 }
 0x1ec   : > { %1480 = vmatmul.mubr.msk.f32.gmra.mrb[24].mxu0 %vm709_vm3, %v696_v44 }
 0x1ed   : > { %905 = vmatprep.mubr.f32.mxu0 %v1883_v30 }
 0x1ef   : > { %v697_v45 = vpop.trf.xlu0 }
 0x1f0   : > { %1481 = vmatmul.mubr.msk.f32.gmra.mrb[26].mxu0 %vm709_vm3, %v697_v45 }
 0x1f1   : > { %911 = vmatprep.mubr.f32.mxu0 %v1883_v30 }
 0x1f3   : > { %v698_v46 = vpop.trf.xlu0 }
 0x1f4   : > { %1482 = vmatmul.mubr.msk.f32.gmra.mrb[28].mxu0 %vm709_vm3, %v698_v46 }
 0x1f5   : > { %917 = vmatprep.mubr.f32.mxu0 %v1883_v30 }
 0x1f7   : > { %v699_v47 = vpop.trf.xlu0 }
 0x1f8   : > { %1483 = vmatmul.mubr.msk.f32.gmra.mrb[30].mxu0 %vm709_vm3, %v699_v47 }
 0x28f   : > { %v2112_v48 = vpop.f32.mrb[0].mxu0 }
 0x290   : > { %v2114_v49 = vpop.f32.mrb[1].mxu0 }
 0x291   : > { %v924_v50 = vmax.f32 %v2112_v48, %v2114_v49 }
 0x293   : > { %925 = vmax.xlane.f32.xlu0 %v924_v50  ;;  %v2118_v51 = vpop.f32.mrb[2].mxu0 }
 0x294   : > { %v2120_v52 = vpop.f32.mrb[3].mxu0 }
 0x295   : > { %v927_v53 = vmax.f32 %v2118_v51, %v2120_v52 }
 0x297   : > { %928 = vmax.xlane.f32.xlu1 %v927_v53  ;;  %v2124_v54 = vpop.f32.mrb[4].mxu0 }
 0x298   : > { %v2126_v55 = vpop.f32.mrb[5].mxu0 }
 0x299   : > { %v930_v56 = vmax.f32 %v2124_v54, %v2126_v55 }
 0x29b   : > { %931 = vmax.xlane.f32.xlu1 %v930_v56  ;;  %v2130_v57 = vpop.f32.mrb[6].mxu0 }
 0x29c   : > { %v2132_v58 = vpop.f32.mrb[7].mxu0 }
 0x29d   : > { %v933_v59 = vmax.f32 %v2130_v57, %v2132_v58 }
 0x29f   : > { %934 = vmax.xlane.f32.xlu1 %v933_v59  ;;  %v2136_v60 = vpop.f32.mrb[8].mxu0 }
 0x2a0   : > { %v2138_v61 = vpop.f32.mrb[9].mxu0 }
 0x2a1   : > { %v936_v62 = vmax.f32 %v2136_v60, %v2138_v61 }
 0x2a3   : > { %937 = vmax.xlane.f32.xlu1 %v936_v62  ;;  %v2142_v63 = vpop.f32.mrb[10].mxu0 }
 0x2a4   : > { %v2144_v0 = vpop.f32.mrb[11].mxu0 }
 0x2a5   : > { %v939_v1 = vmax.f32 %v2142_v63, %v2144_v0 }
 0x2a7   : > { %940 = vmax.xlane.f32.xlu1 %v939_v1  ;;  %v2148_v2 = vpop.f32.mrb[12].mxu0 }
 0x2a8   : > { %v2150_v3 = vpop.f32.mrb[13].mxu0 }
 0x2a9   : > { %v942_v4 = vmax.f32 %v2148_v2, %v2150_v3 }
 0x2ab   : > { %943 = vmax.xlane.f32.xlu1 %v942_v4  ;;  %v2154_v5 = vpop.f32.mrb[14].mxu0 }
 0x2ac   : > { %v2156_v6 = vpop.f32.mrb[15].mxu0 }
 0x2ad   : > { %v945_v7 = vmax.f32 %v2154_v5, %v2156_v6 }
 0x2af   : > { %946 = vmax.xlane.f32.xlu1 %v945_v7  ;;  %v2160_v8 = vpop.f32.mrb[16].mxu0 }
 0x2b0   : > { %v2162_v9 = vpop.f32.mrb[17].mxu0 }
 0x2b1   : > { %v948_v10 = vmax.f32 %v2160_v8, %v2162_v9 }
 0x2b3   : > { %949 = vmax.xlane.f32.xlu1 %v948_v10  ;;  %v2166_v11 = vpop.f32.mrb[18].mxu0 }
 0x2b4   : > { %v2168_v12 = vpop.f32.mrb[19].mxu0 }
 0x2b5   : > { %v951_v13 = vmax.f32 %v2166_v11, %v2168_v12 }
 0x2b7   : > { %952 = vmax.xlane.f32.xlu1 %v951_v13  ;;  %v2172_v14 = vpop.f32.mrb[20].mxu0 }
 0x2b8   : > { %v2174_v15 = vpop.f32.mrb[21].mxu0 }
 0x2b9   : > { %v954_v16 = vmax.f32 %v2172_v14, %v2174_v15 }
 0x2bb   : > { %955 = vmax.xlane.f32.xlu1 %v954_v16  ;;  %v2178_v17 = vpop.f32.mrb[22].mxu0 }
 0x2bc   : > { %v2180_v18 = vpop.f32.mrb[23].mxu0 }
 0x2bd   : > { %v957_v19 = vmax.f32 %v2178_v17, %v2180_v18 }
 0x2bf   : > { %958 = vmax.xlane.f32.xlu1 %v957_v19  ;;  %v2184_v20 = vpop.f32.mrb[24].mxu0 }
 0x2c0   : > { %v2186_v21 = vpop.f32.mrb[25].mxu0 }
 0x2c1   : > { %v960_v22 = vmax.f32 %v2184_v20, %v2186_v21 }
 0x2c3   : > { %961 = vmax.xlane.f32.xlu1 %v960_v22  ;;  %v2190_v23 = vpop.f32.mrb[26].mxu0 }
 0x2c4   : > { %v2192_v24 = vpop.f32.mrb[27].mxu0 }
 0x2c5   : > { %v963_v25 = vmax.f32 %v2190_v23, %v2192_v24 }
 0x2c7   : > { %964 = vmax.xlane.f32.xlu1 %v963_v25  ;;  %v2196_v26 = vpop.f32.mrb[28].mxu0 }
 0x2c8   : > { %v2198_v27 = vpop.f32.mrb[29].mxu0 }
 0x2c9   : > { %v966_v28 = vmax.f32 %v2196_v26, %v2198_v27 }
 0x2cb   : > { %967 = vmax.xlane.f32.xlu1 %v966_v28  ;;  %v2202_v29 = vpop.f32.mrb[30].mxu0 }
 0x2cc   : > { %v2204_v30 = vpop.f32.mrb[31].mxu0 }
 0x2cd   : > { %v969_v31 = vmax.f32 %v2202_v29, %v2204_v30 }
 0x2cf   : > { %970 = vmax.xlane.f32.xlu1 %v969_v31 }
 0x320   : > { %v926_v32 = vpop.xlane.xlu0 %925 }
 0x321   : > { %v972_v33 = vsub.f32 %v2112_v48, %v926_v32  ;;  %v973_v34 = vsub.f32 %v2114_v49, %v926_v32 }
 0x323   : > { %v1004_v35 = vmul.f32 1.442695, %v972_v33  ;;  %v1006_v36 = vmul.f32 1.442695, %v973_v34 }
 0x324   : > { %v929_v37 = vpop.xlane.xlu1 %928 }
 0x325   : > { %1624 = vpow2.f32 %v1004_v35  ;;  %v974_v38 = vsub.f32 %v2118_v51, %v929_v37  ;;  %v975_v39 = vsub.f32 %v2120_v52, %v929_v37 }
 0x326   : > { %1626 = vpow2.f32 %v1006_v36 }
 0x327   : > { %v1008_v40 = vmul.f32 1.442695, %v974_v38  ;;  %v1010_v41 = vmul.f32 1.442695, %v975_v39 }
 0x328   : > { %v932_v42 = vpop.xlane.xlu1 %931 }
 0x329   : > { %1628 = vpow2.f32 %v1008_v40  ;;  %v976_v43 = vsub.f32 %v2124_v54, %v932_v42  ;;  %v977_v44 = vsub.f32 %v2126_v55, %v932_v42 }
 0x32a   : > { %1630 = vpow2.f32 %v1010_v41 }
 0x32b   : > { %v1012_v45 = vmul.f32 1.442695, %v976_v43  ;;  %v1014_v46 = vmul.f32 1.442695, %v977_v44 }
 0x32c   : > { %v935_v47 = vpop.xlane.xlu1 %934 }
 0x32d   : > { %1632 = vpow2.f32 %v1012_v45  ;;  %v978_v48 = vsub.f32 %v2130_v57, %v935_v47  ;;  %v979_v49 = vsub.f32 %v2132_v58, %v935_v47 }
 0x32e   : > { %1634 = vpow2.f32 %v1014_v46 }
 0x32f   : > { %v2216_v50 = vpop.eup %1624  ;;  %v1016_v51 = vmul.f32 1.442695, %v978_v48  ;;  %v1018_v52 = vmul.f32 1.442695, %v979_v49 }
 0x330   : > { %v2218_v53 = vpop.eup %1626  ;;  %v938_v56 = vpop.xlane.xlu1 %937 }
 0x331   : > { %1636 = vpow2.f32 %v1016_v51  ;;  %v980_v54 = vsub.f32 %v2136_v60, %v938_v56  ;;  %v981_v55 = vsub.f32 %v2138_v61, %v938_v56  ;;  %v1068_v59 = vadd.f32 %v2218_v53, %v2216_v50 }
 0x332   : > { %1638 = vpow2.f32 %v1018_v52 }
 0x333   : > { %v2224_v57 = vpop.eup %1628  ;;  %v1020_v58 = vmul.f32 1.442695, %v980_v54  ;;  %v1022_v62 = vmul.f32 1.442695, %v981_v55  ;;  %1069 = vadd.xlane.f32.xlu1 %v1068_v59 }
 0x334   : > { %v2226_v1 = vpop.eup %1630  ;;  %v941_v4 = vpop.xlane.xlu1 %940 }
 0x335   : > { %1640 = vpow2.f32 %v1020_v58  ;;  %v982_v7 = vsub.f32 %v2142_v63, %v941_v4  ;;  %v983_v10 = vsub.f32 %v2144_v0, %v941_v4  ;;  %v1071_v60 = vadd.f32 %v2226_v1, %v2224_v57 }
 0x336   : > { %1642 = vpow2.f32 %v1022_v62 }
 0x337   : > { %v2232_v61 = vpop.eup %1632  ;;  %v1024_v13 = vmul.f32 1.442695, %v982_v7  ;;  %v1026_v16 = vmul.f32 1.442695, %v983_v10  ;;  %1072 = vadd.xlane.f32.xlu1 %v1071_v60 }
 0x338   : > { %v2234_v19 = vpop.eup %1634  ;;  %v944_v22 = vpop.xlane.xlu1 %943 }
 0x339   : > { %1644 = vpow2.f32 %v1024_v13  ;;  %v984_v25 = vsub.f32 %v2148_v2, %v944_v22  ;;  %v985_v28 = vsub.f32 %v2150_v3, %v944_v22  ;;  %v1074_v63 = vadd.f32 %v2234_v19, %v2232_v61 }
 0x33a   : > { %1646 = vpow2.f32 %v1026_v16 }
 0x33b   : > { %v2240_v0 = vpop.eup %1636  ;;  %v1028_v31 = vmul.f32 1.442695, %v984_v25  ;;  %v1030_v32 = vmul.f32 1.442695, %v985_v28  ;;  %1075 = vadd.xlane.f32.xlu1 %v1074_v63 }
 0x33c   : > { %v2242_v33 = vpop.eup %1638  ;;  %v947_v34 = vpop.xlane.xlu1 %946 }
 0x33d   : > { %1648 = vpow2.f32 %v1028_v31  ;;  %v986_v35 = vsub.f32 %v2154_v5, %v947_v34  ;;  %v987_v36 = vsub.f32 %v2156_v6, %v947_v34  ;;  %v1077_v2 = vadd.f32 %v2242_v33, %v2240_v0 }
 0x33e   : > { %1650 = vpow2.f32 %v1030_v32 }
 0x33f   : > { %v2248_v3 = vpop.eup %1640  ;;  %v1032_v37 = vmul.f32 1.442695, %v986_v35  ;;  %v1034_v38 = vmul.f32 1.442695, %v987_v36  ;;  %1078 = vadd.xlane.f32.xlu1 %v1077_v2 }
 0x340   : > { %v2250_v39 = vpop.eup %1642  ;;  %v950_v40 = vpop.xlane.xlu1 %949 }
 0x341   : > { %1652 = vpow2.f32 %v1032_v37  ;;  %v988_v41 = vsub.f32 %v2160_v8, %v950_v40  ;;  %v989_v42 = vsub.f32 %v2162_v9, %v950_v40  ;;  %v1080_v5 = vadd.f32 %v2250_v39, %v2248_v3 }
 0x342   : > { %1654 = vpow2.f32 %v1034_v38 }
 0x343   : > { %v2256_v6 = vpop.eup %1644  ;;  %v1036_v43 = vmul.f32 1.442695, %v988_v41  ;;  %v1038_v44 = vmul.f32 1.442695, %v989_v42  ;;  %1081 = vadd.xlane.f32.xlu1 %v1080_v5 }
 0x344   : > { %v2258_v45 = vpop.eup %1646  ;;  %v953_v46 = vpop.xlane.xlu1 %952 }
 0x345   : > { %1656 = vpow2.f32 %v1036_v43  ;;  %v990_v47 = vsub.f32 %v2166_v11, %v953_v46  ;;  %v991_v48 = vsub.f32 %v2168_v12, %v953_v46  ;;  %v1083_v8 = vadd.f32 %v2258_v45, %v2256_v6 }
 0x346   : > { %1658 = vpow2.f32 %v1038_v44 }
 0x347   : > { %v2264_v9 = vpop.eup %1648  ;;  %v1040_v49 = vmul.f32 1.442695, %v990_v47  ;;  %v1042_v51 = vmul.f32 1.442695, %v991_v48  ;;  %1084 = vadd.xlane.f32.xlu1 %v1083_v8 }
 0x348   : > { %v2266_v52 = vpop.eup %1650  ;;  %v956_v56 = vpop.xlane.xlu1 %955 }
 0x349   : > { %1660 = vpow2.f32 %v1040_v49  ;;  %v992_v54 = vsub.f32 %v2172_v14, %v956_v56  ;;  %v993_v55 = vsub.f32 %v2174_v15, %v956_v56  ;;  %v1086_v11 = vadd.f32 %v2266_v52, %v2264_v9 }
 0x34a   : > { %1662 = vpow2.f32 %v1042_v51 }
 0x34b   : > { %v2272_v12 = vpop.eup %1652  ;;  %v1044_v59 = vmul.f32 1.442695, %v992_v54  ;;  %v1046_v58 = vmul.f32 1.442695, %v993_v55  ;;  %1087 = vadd.xlane.f32.xlu1 %v1086_v11 }
 0x34c   : > { %v2274_v62 = vpop.eup %1654  ;;  %v959_v4 = vpop.xlane.xlu1 %958 }
 0x34d   : > { %1664 = vpow2.f32 %v1044_v59  ;;  %v994_v7 = vsub.f32 %v2178_v17, %v959_v4  ;;  %v995_v10 = vsub.f32 %v2180_v18, %v959_v4  ;;  %v1089_v14 = vadd.f32 %v2274_v62, %v2272_v12 }
 0x34e   : > { %1666 = vpow2.f32 %v1046_v58 }
 0x34f   : > { %v2280_v15 = vpop.eup %1656  ;;  %v1048_v60 = vmul.f32 1.442695, %v994_v7  ;;  %v1050_v13 = vmul.f32 1.442695, %v995_v10  ;;  %1090 = vadd.xlane.f32.xlu1 %v1089_v14  ;;  %v2336_v10 = vld [vmem:[#allocation4] sm:$0xff] }
 0x350   : > { %v2282_v16 = vpop.eup %1658  ;;  %v962_v22 = vpop.xlane.xlu1 %961  ;;  %v1198_v14 = vcombine.high %v2336_v10, %v2336_v10 }
 0x351   : > { %1668 = vpow2.f32 %v1048_v60  ;;  %v996_v25 = vsub.f32 %v2184_v20, %v962_v22  ;;  %v997_v28 = vsub.f32 %v2186_v21, %v962_v22  ;;  %v1092_v17 = vadd.f32 %v2282_v16, %v2280_v15 }
 0x352   : > { %1670 = vpow2.f32 %v1050_v13  ;;  %1264 = vmatprep.mubr.f32.mxu1 %v1198_v14 }
 0x353   : > { %v2288_v18 = vpop.eup %1660  ;;  %v1052_v63 = vmul.f32 1.442695, %v996_v25  ;;  %v1054_v31 = vmul.f32 1.442695, %v997_v28  ;;  %1093 = vadd.xlane.f32.xlu1 %v1092_v17 }
 0x354   : > { %v2290_v32 = vpop.eup %1662  ;;  %v965_v34 = vpop.xlane.xlu1 %964 }
 0x355   : > { %1672 = vpow2.f32 %v1052_v63  ;;  %v998_v35 = vsub.f32 %v2190_v23, %v965_v34  ;;  %v999_v36 = vsub.f32 %v2192_v24, %v965_v34  ;;  %v1095_v20 = vadd.f32 %v2290_v32, %v2288_v18 }
 0x356   : > { %1674 = vpow2.f32 %v1054_v31 }
 0x357   : > { %v2296_v21 = vpop.eup %1664  ;;  %v1056_v2 = vmul.f32 1.442695, %v998_v35  ;;  %v1058_v37 = vmul.f32 1.442695, %v999_v36  ;;  %1096 = vadd.xlane.f32.xlu1 %v1095_v20 }
 0x358   : > { %v2298_v38 = vpop.eup %1666  ;;  %v968_v40 = vpop.xlane.xlu1 %967 }
 0x359   : > { %1676 = vpow2.f32 %v1056_v2  ;;  %v1000_v41 = vsub.f32 %v2196_v26, %v968_v40  ;;  %v1001_v42 = vsub.f32 %v2198_v27, %v968_v40  ;;  %v1098_v23 = vadd.f32 %v2298_v38, %v2296_v21 }
 0x35a   : > { %1678 = vpow2.f32 %v1058_v37 }
 0x35b   : > { %v2304_v24 = vpop.eup %1668  ;;  %v1060_v5 = vmul.f32 1.442695, %v1000_v41  ;;  %v1062_v43 = vmul.f32 1.442695, %v1001_v42  ;;  %1099 = vadd.xlane.f32.xlu1 %v1098_v23 }
 0x35c   : > { %v2306_v44 = vpop.eup %1670  ;;  %v971_v46 = vpop.xlane.xlu1 %970 }
 0x35d   : > { %1680 = vpow2.f32 %v1060_v5  ;;  %v1002_v47 = vsub.f32 %v2202_v29, %v971_v46  ;;  %v1003_v48 = vsub.f32 %v2204_v30, %v971_v46  ;;  %v1101_v26 = vadd.f32 %v2306_v44, %v2304_v24 }
 0x35e   : > { %1682 = vpow2.f32 %v1062_v43 }
 0x35f   : > { %v2312_v27 = vpop.eup %1672  ;;  %v1064_v8 = vmul.f32 1.442695, %v1002_v47  ;;  %v1066_v49 = vmul.f32 1.442695, %v1003_v48  ;;  %1102 = vadd.xlane.f32.xlu1 %v1101_v26 }
 0x360   : > { %v2314_v51 = vpop.eup %1674 }
 0x361   : > { %1684 = vpow2.f32 %v1064_v8  ;;  %v1104_v56 = vadd.f32 %v2314_v51, %v2312_v27 }
 0x362   : > { %1686 = vpow2.f32 %v1066_v49 }
 0x363   : > { %v2318_v54 = vpop.eup %1676  ;;  %1105 = vadd.xlane.f32.xlu1 %v1104_v56 }
 0x364   : > { %v2320_v29 = vpop.eup %1678 }
 0x365   : > { %v1107_v30 = vadd.f32 %v2320_v29, %v2318_v54 }
 0x367   : > { %v2324_v55 = vpop.eup %1680  ;;  %1108 = vadd.xlane.f32.xlu0 %v1107_v30 }
 0x368   : > { %v2326_v11 = vpop.eup %1682 }
 0x369   : > { %v1110_v59 = vadd.f32 %v2326_v11, %v2324_v55 }
 0x36b   : > { %v2330_v58 = vpop.eup %1684  ;;  %1111 = vadd.xlane.f32.xlu1 %v1110_v59 }
 0x36c   : > { %v2332_v4 = vpop.eup %1686 }
 0x36d   : > { %v1113_v7 = vadd.f32 %v2332_v4, %v2330_v58 }
 0x36f   : > { %1114 = vadd.xlane.f32.xlu0 %v1113_v7 }
 0x3c0   : > { %v1070_v60 = vpop.xlane.xlu1 %1069 }
 0x3c1   : > { %1688 = vrcp.f32 %v1070_v60 }
 0x3c4   : > { %v1073_v13 = vpop.xlane.xlu1 %1072 }
 0x3c5   : > { %1690 = vrcp.f32 %v1073_v13 }
 0x3c8   : > { %v1076_v22 = vpop.xlane.xlu1 %1075 }
 0x3c9   : > { %1692 = vrcp.f32 %v1076_v22 }
 0x3cb   : > { %v1689_v25 = vpop.eup %1688 }
 0x3cc   : > { %v1079_v28 = vpop.xlane.xlu1 %1078  ;;  %v1133_v17 = vmul.f32 %v1689_v25, %v2218_v53  ;;  %v1132_v63 = vmul.f32 %v1689_v25, %v2216_v50 }
 0x3cd   : > { %1694 = vrcp.f32 %v1079_v28 }
 0x3ce   : > { %1165 = vst [vmem:[%s2064_s29 + $0x8] sm:$0xff] %v1133_v17  ;;  %1164 = vst [vmem:[%s2064_s29] sm:$0xff] %v1132_v63 }
 0x3cf   : > { %v1691_v31 = vpop.eup %1690 }
 0x3d0   : > { %v1082_v34 = vpop.xlane.xlu1 %1081  ;;  %v1135_v35 = vmul.f32 %v1691_v31, %v2226_v1  ;;  %v1134_v36 = vmul.f32 %v1691_v31, %v2224_v57 }
 0x3d1   : > { %1696 = vrcp.f32 %v1082_v34 }
 0x3d2   : > { %1167 = vst [vmem:[%s2064_s29 + $0x18] sm:$0xff] %v1135_v35  ;;  %v1496_v20 = vpack.c.bf16 %v1135_v35, %v1133_v17  ;;  %1166 = vst [vmem:[%s2064_s29 + $0x10] sm:$0xff] %v1134_v36  ;;  %v1498_v2 = vpack.c.bf16 %v1134_v36, %v1132_v63 }
 0x3d3   : > { %v1693_v53 = vpop.eup %1692 }
 0x3d4   : > { %1497 = vmatprep.subr.bf16.mxu1 %v1496_v20  ;;  %v1085_v50 = vpop.xlane.xlu1 %1084  ;;  %v1137_v37 = vmul.f32 %v1693_v53, %v2234_v19  ;;  %v1136_v40 = vmul.f32 %v1693_v53, %v2232_v61 }
 0x3d5   : > { %1698 = vrcp.f32 %v1085_v50  ;;  %1499 = vmatpush1.bf16.xpose.msra.mxu1 %v1498_v2 }
 0x3d6   : > { %1169 = vst [vmem:[%s2064_s29 + $0x28] sm:$0xff] %v1137_v37  ;;  %1168 = vst [vmem:[%s2064_s29 + $0x20] sm:$0xff] %v1136_v40 }
 0x3d7   : > { %v1695_v1 = vpop.eup %1694 }
 0x3d8   : > { %v1088_v57 = vpop.xlane.xlu1 %1087  ;;  %v1139_v41 = vmul.f32 %v1695_v1, %v2242_v33  ;;  %v1138_v42 = vmul.f32 %v1695_v1, %v2240_v0 }
 0x3d9   : > { %1700 = vrcp.f32 %v1088_v57 }
 0x3da   : > { %1171 = vst [vmem:[%s2064_s29 + $0x38] sm:$0xff] %v1139_v41  ;;  %v1500_v23 = vpack.c.bf16 %v1139_v41, %v1137_v37  ;;  %1170 = vst [vmem:[%s2064_s29 + $0x30] sm:$0xff] %v1138_v42  ;;  %v1502_v19 = vpack.c.bf16 %v1138_v42, %v1136_v40 }
 0x3db   : > { %v1697_v5 = vpop.eup %1696 }
 0x3dc   : > { %1501 = vmatprep.subr.bf16.mxu1 %v1500_v23  ;;  %v1091_v61 = vpop.xlane.xlu1 %1090  ;;  %v1141_v43 = vmul.f32 %v1697_v5, %v2250_v39  ;;  %v1140_v46 = vmul.f32 %v1697_v5, %v2248_v3 }
 0x3dd   : > { %1702 = vrcp.f32 %v1091_v61  ;;  %1503 = vmatpush1.bf16.xpose.msra.mxu1 %v1502_v19 }
 0x3de   : > { %1173 = vst [vmem:[%s2064_s29 + $0x48] sm:$0xff] %v1141_v43  ;;  %1172 = vst [vmem:[%s2064_s29 + $0x40] sm:$0xff] %v1140_v46 }
 0x3df   : > { %v1699_v33 = vpop.eup %1698 }
 0x3e0   : > { %v1094_v0 = vpop.xlane.xlu1 %1093  ;;  %v1143_v47 = vmul.f32 %v1699_v33, %v2258_v45  ;;  %v1142_v48 = vmul.f32 %v1699_v33, %v2256_v6 }
 0x3e1   : > { %1704 = vrcp.f32 %v1094_v0 }
 0x3e2   : > { %1175 = vst [vmem:[%s2064_s29 + $0x58] sm:$0xff] %v1143_v47  ;;  %v1504_v26 = vpack.c.bf16 %v1143_v47, %v1141_v43  ;;  %1174 = vst [vmem:[%s2064_s29 + $0x50] sm:$0xff] %v1142_v48  ;;  %v1506_v39 = vpack.c.bf16 %v1142_v48, %v1140_v46 }
 0x3e3   : > { %v1701_v8 = vpop.eup %1700 }
 0x3e4   : > { %1505 = vmatprep.subr.bf16.mxu1 %v1504_v26  ;;  %v1097_v3 = vpop.xlane.xlu1 %1096  ;;  %v1145_v49 = vmul.f32 %v1701_v8, %v2266_v52  ;;  %v1144_v56 = vmul.f32 %v1701_v8, %v2264_v9 }
 0x3e5   : > { %1706 = vrcp.f32 %v1097_v3  ;;  %1507 = vmatpush1.bf16.xpose.msra.mxu1 %v1506_v39 }
 0x3e6   : > { %1177 = vst [vmem:[%s2064_s29 + $0x68] sm:$0xff] %v1145_v49  ;;  %1176 = vst [vmem:[%s2064_s29 + $0x60] sm:$0xff] %v1144_v56 }
 0x3e7   : > { %v1703_v45 = vpop.eup %1702 }
 0x3e8   : > { %v1100_v6 = vpop.xlane.xlu1 %1099  ;;  %v1147_v30 = vmul.f32 %v1703_v45, %v2274_v62  ;;  %v1146_v59 = vmul.f32 %v1703_v45, %v2272_v12 }
 0x3e9   : > { %1708 = vrcp.f32 %v1100_v6 }
 0x3ea   : > { %1179 = vst [vmem:[%s2064_s29 + $0x78] sm:$0xff] %v1147_v30  ;;  %v1508_v7 = vpack.c.bf16 %v1147_v30, %v1145_v49  ;;  %1178 = vst [vmem:[%s2064_s29 + $0x70] sm:$0xff] %v1146_v59  ;;  %v1510_v52 = vpack.c.bf16 %v1146_v59, %v1144_v56 }
 0x3eb   : > { %v1705_v14 = vpop.eup %1704 }
 0x3ec   : > { %1509 = vmatprep.subr.bf16.mxu1 %v1508_v7  ;;  %v1103_v9 = vpop.xlane.xlu1 %1102  ;;  %v1149_v60 = vmul.f32 %v1705_v14, %v2282_v16  ;;  %v1148_v13 = vmul.f32 %v1705_v14, %v2280_v15 }
 0x3ed   : > { %1710 = vrcp.f32 %v1103_v9  ;;  %1511 = vmatpush1.bf16.xpose.msra.mxu1 %v1510_v52 }
 0x3ee   : > { %1181 = vst [vmem:[%s2064_s29 + $0x88] sm:$0xff] %v1149_v60  ;;  %1180 = vst [vmem:[%s2064_s29 + $0x80] sm:$0xff] %v1148_v13 }
 0x3ef   : > { %v1707_v62 = vpop.eup %1706 }
 0x3f0   : > { %v1106_v12 = vpop.xlane.xlu1 %1105  ;;  %v1151_v22 = vmul.f32 %v1707_v62, %v2290_v32  ;;  %v1150_v25 = vmul.f32 %v1707_v62, %v2288_v18 }
 0x3f1   : > { %1712 = vrcp.f32 %v1106_v12 }
 0x3f2   : > { %1183 = vst [vmem:[%s2064_s29 + $0x98] sm:$0xff] %v1151_v22  ;;  %v1512_v28 = vpack.c.bf16 %v1151_v22, %v1149_v60  ;;  %1182 = vst [vmem:[%s2064_s29 + $0x90] sm:$0xff] %v1150_v25  ;;  %v1514_v16 = vpack.c.bf16 %v1150_v25, %v1148_v13 }
 0x3f3   : > { %v1709_v17 = vpop.eup %1708 }
 0x3f4   : > { %1513 = vmatprep.subr.bf16.mxu1 %v1512_v28  ;;  %v1109_v15 = vpop.xlane.xlu0 %1108  ;;  %v1153_v63 = vmul.f32 %v1709_v17, %v2298_v38  ;;  %v1152_v31 = vmul.f32 %v1709_v17, %v2296_v21 }
 0x3f5   : > { %1714 = vrcp.f32 %v1109_v15  ;;  %1515 = vmatpush1.bf16.xpose.msra.mxu1 %v1514_v16 }
 0x3f6   : > { %1185 = vst [vmem:[%s2064_s29 + $0xa8] sm:$0xff] %v1153_v63  ;;  %1184 = vst [vmem:[%s2064_s29 + $0xa0] sm:$0xff] %v1152_v31 }
 0x3f7   : > { %v1711_v32 = vpop.eup %1710 }
 0x3f8   : > { %v1112_v18 = vpop.xlane.xlu1 %1111  ;;  %v1155_v34 = vmul.f32 %v1711_v32, %v2306_v44  ;;  %v1154_v35 = vmul.f32 %v1711_v32, %v2304_v24 }
 0x3f9   : > { %1716 = vrcp.f32 %v1112_v18 }
 0x3fa   : > { %1187 = vst [vmem:[%s2064_s29 + $0xb8] sm:$0xff] %v1155_v34  ;;  %v1516_v36 = vpack.c.bf16 %v1155_v34, %v1153_v63  ;;  %1186 = vst [vmem:[%s2064_s29 + $0xb0] sm:$0xff] %v1154_v35  ;;  %v1518_v38 = vpack.c.bf16 %v1154_v35, %v1152_v31 }
 0x3fb   : > { %v1713_v21 = vpop.eup %1712 }
 0x3fc   : > { %1517 = vmatprep.subr.bf16.mxu1 %v1516_v36  ;;  %v1115_v20 = vpop.xlane.xlu0 %1114  ;;  %v1157_v2 = vmul.f32 %v1713_v21, %v2314_v51  ;;  %v1156_v53 = vmul.f32 %v1713_v21, %v2312_v27 }
 0x3fd   : > { %1718 = vrcp.f32 %v1115_v20  ;;  %1519 = vmatpush1.bf16.xpose.msra.mxu1 %v1518_v38 }
 0x3fe   : > { %1189 = vst [vmem:[%s2064_s29 + $0xc8] sm:$0xff] %v1157_v2  ;;  %1188 = vst [vmem:[%s2064_s29 + $0xc0] sm:$0xff] %v1156_v53 }
 0x3ff   : > { %v1715_v24 = vpop.eup %1714 }
 0x400   : > { %v1159_v44 = vmul.f32 %v1715_v24, %v2320_v29  ;;  %v1158_v50 = vmul.f32 %v1715_v24, %v2318_v54 }
 0x402   : > { %1191 = vst [vmem:[%s2064_s29 + $0xd8] sm:$0xff] %v1159_v44  ;;  %v1520_v37 = vpack.c.bf16 %v1159_v44, %v1157_v2  ;;  %1190 = vst [vmem:[%s2064_s29 + $0xd0] sm:$0xff] %v1158_v50  ;;  %v1522_v40 = vpack.c.bf16 %v1158_v50, %v1156_v53 }
 0x403   : > { %v1717_v51 = vpop.eup %1716 }
 0x404   : > { %1521 = vmatprep.subr.bf16.mxu1 %v1520_v37  ;;  %v1161_v27 = vmul.f32 %v1717_v51, %v2326_v11  ;;  %v1160_v1 = vmul.f32 %v1717_v51, %v2324_v55 }
 0x405   : > { %1523 = vmatpush1.bf16.xpose.msra.mxu1 %v1522_v40 }
 0x406   : > { %1193 = vst [vmem:[%s2064_s29 + $0xe8] sm:$0xff] %v1161_v27  ;;  %1192 = vst [vmem:[%s2064_s29 + $0xe0] sm:$0xff] %v1160_v1 }
 0x407   : > { %v1719_v29 = vpop.eup %1718 }
 0x408   : > { %v1163_v54 = vmul.f32 %v1719_v29, %v2332_v4  ;;  %v1162_v57 = vmul.f32 %v1719_v29, %v2330_v58 }
 0x40a   : > { %1195 = vst [vmem:[%s2064_s29 + $0xf8] sm:$0xff] %v1163_v54  ;;  %v1524_v41 = vpack.c.bf16 %v1163_v54, %v1161_v27  ;;  %1194 = vst [vmem:[%s2064_s29 + $0xf0] sm:$0xff] %v1162_v57  ;;  %v1526_v42 = vpack.c.bf16 %v1162_v57, %v1160_v1  ;;  %s1754_s29 = scalar_lea.vmem %s1753_s28, 8192 }
 0x40b   : > { %p1756_p6 = scmp.lt.s32.totalorder %s1754_s29, %s1748_s3 }
 0x40c   : > { %1525 = vmatprep.subr.bf16.mxu1 %v1524_v41 }
 0x40d   : > { %1527 = vmatpush1.bf16.xpose.msra.mxu1 %v1526_v42  ;;  %p1757_p7 = por %p1756_p6, %p1755_p5 }
 0x40f   : > { %p1758_p9 = pnand %p1757_p7, %p1751_p2 }
 0x414   : > { %1265 = vmatmul.mubr.f32.vlgmr.msra.gmra.mrb[0].mxu1 %v2336_v10 }
 0x415   : > { %1761 = shalt.err (!%p1758_p9)
}
 0x416   : > { %s1762_s18 = scalar_lea.hbm %s2413_s1, 4096  ;;  %s1766_s4 = scalar_lea.hbm %s2511_s9, 16384 }
 0x417   : > { %p1763_p11 = scmp.ne.s32.totalorder %s2413_s1, %s1762_s18  ;;  %p1767_p4 = scmp.lt.u32.totalorder %s2413_s1, %s2511_s9 }
 0x418   : > { %p1768_p3 = scmp.lt.u32.totalorder %s1766_s4, %s1762_s18  ;;  %p1770_p10 = scmp.lt.u32.totalorder %s1762_s18, %s2413_s1 }
 0x419   : > { %p1764_p13 = pnand %p1763_p11, %p2541_p12 }
 0x41a   : > { %p1769_p8 = por %p1768_p3, %p1767_p4 }
 0x41b   : > { %p1765_p1 = pneg %p1764_p13 }
 0x41c   : > { %p1771_p0 = por %p1770_p10, %p1769_p8 }
 0x41e   : > { %p1772_p2 = pnand %p1771_p0, %p1765_p1 }
 0x420   : > { %1775 = shalt.err (!%p1772_p2)
}
 0x421   : > { %s1885_s3 = smov 256   ;;  %s1886_s28 = smov 16  }
 0x422   : > { %1533 = dma.vmem_to_hbm [thread:$0]  (%p2541_p12), %s2408_s21, 4096, %s2413_s1, %s1282_s2, %s1885_s3, %s1885_s3, %s1886_s28  }
 0x423   : > { %s1463_s29 = sshll.u32 %s2093_s26, 2  ;;  %s1270_s18 = sld [smem:[#allocation5]] }
 0x424   : > { %s662_s20 = scalar_lea.vmem %s2060_s22, %s1463_s29  ;;  %s1486_s23 = sshll.u32 %s1866_s15, 1 }
 0x425   : > { %v663_v55 = vld [vmem:[%s662_s20] sm:$0xf]  ;;  %s1293_s4 = sadd.s32 %s1862_s14, %s1486_s23  ;;  %s1297_s27 = sshll.u32 %s2062_s10, 4  ;;  %s2449_s27 = int_to_ptr.vmem [resolvable:$true] %s1297_s27 }
 0x426   : > { %v1273_v58 = vmul.f32 0.001, %v663_v55  ;;  %s1487_s19 = sshll.u32 %s1293_s4, 6  ;;  %s1277_s2 = scalar_lea.sflag [#allocation8], %s2051_s17 }
 0x427   : > { %s2447_s1 = scalar_lea.hbm %s2510_s8, %s1487_s19  ;;  %s1776_s14 = scalar_lea.vmem %s2449_s27, 64 }
 0x428   : > { %p1777_p5 = scmp.ne.s32.totalorder %s2449_s27, %s1776_s14  ;;  %s1887_s15 = smov [#allocation9]  }
 0x429   : > { %v1271_v11 = vstv %s1270_s18  ;;  %s1780_s22 = sshll.u32 %s1887_s15, 4  ;;  %s1781_s22 = int_to_ptr.vmem [resolvable:$false] %s1780_s22 }
 0x42a   : > { %p1778_p6 = pnand %p1777_p5, %p2541_p12  ;;  %s1782_s26 = scalar_lea.vmem %s1781_s22, 128 }
 0x42b   : > { %p1783_p9 = scmp.lt.s32.totalorder %s2449_s27, %s1781_s22  ;;  %p1784_p11 = scmp.lt.s32.totalorder %s1782_s26, %s1776_s14 }
 0x42c   : > { %p1779_p7 = pneg %p1778_p6 }
 0x42d   : > { %p1785_p13 = por %p1784_p11, %p1783_p9 }
 0x42f   : > { %p1786_p1 = pnand %p1785_p13, %p1779_p7 }
 0x4e7   : > { %v1266_v4 = vpop.f32.mrb[0].mxu1 }
 0x4e8   : > { %v1272_v10 = vmul.f32 %v1271_v11, %v1266_v4  ;;  %v1268_v23 = vpop.f32.mrb[1].mxu1 }
 0x4ea   : > { %v1274_v19 = vadd.f32 %v1273_v58, %v1272_v10 }
 0x4ec   : > { %1275 = vst [vmem:[%s2062_s10] sm:$0xf] %v1274_v19 }
 0x4ed   : > { %1789 = shalt.err (!%p1786_p1)
}
 0x4ee   : > { %s1790_s5 = scalar_lea.hbm %s2447_s1, 64  ;;  %s1794_s10 = scalar_lea.hbm %s2510_s8, 256 }
 0x4ef   : > { %p1791_p4 = scmp.ne.s32.totalorder %s2447_s1, %s1790_s5  ;;  %p1795_p10 = scmp.lt.u32.totalorder %s2447_s1, %s2510_s8 }
 0x4f0   : > { %p1796_p0 = scmp.lt.u32.totalorder %s1794_s10, %s1790_s5  ;;  %p1798_p5 = scmp.lt.u32.totalorder %s1790_s5, %s2447_s1 }
 0x4f1   : > { %p1792_p3 = pnand %p1791_p4, %p2541_p12 }
 0x4f2   : > { %p1797_p2 = por %p1796_p0, %p1795_p10 }
 0x4f3   : > { %p1793_p8 = pneg %p1792_p3 }
 0x4f4   : > { %p1799_p6 = por %p1798_p5, %p1797_p2 }
 0x4f6   : > { %p1800_p7 = pnand %p1799_p6, %p1793_p8 }
 0x4f8   : > { %1803 = shalt.err (!%p1800_p7)
}
 0x4f9   : > { %1532 = dma.vmem_to_hbm [thread:$0]  (%p2541_p12), %s2449_s27, 64, %s2447_s1, %s1277_s2  }
 0x4fa PF: > { %p1549_p9 = scmp.ge.s32.totalorder %s1878_s0, 2  ;;  %s1328_s28 = sand.u32 1, %s1850_s11  }
 0x4fb   : > { %p2542_p11 = scmp.ne.s32.totalorder %s2529_s25, 0  ;;  %s1329_s29 = scalar_lea.sflag [#allocation8], %s1328_s28 }
 0x4fd   : > { %p1541_p13 = pnand %p1549_p9, %p2542_p11 }
 0x4ff   : > { %1841 = dma.done.wait (!%p1541_p13), %s1329_s29, 64  }
 0x500   : > { %1843 = vsyncadd (!%p1541_p13), %s1329_s29, 4294967232  ;;  %s1338_s18 = scalar_lea.sflag [#allocation11], %s1328_s28 }
 0x501   : > { %1845 = dma.done.wait (!%p1541_p13), %s1338_s18, 4096  }
 0x502   : > { %1847 = vsyncadd (!%p1541_p13), %s1338_s18, 4294963200  ;;  %s28_s0 = sadd.s32 1, %s1878_s0   ;;  %s2543_s15 = sld [smem:[#allocation15_spill]] }
 0x503   : > { %p25_p1 = scmp.ge.s32.totalorder %s28_s0, 6   ;;  %s2544_s24 = sld [smem:[#allocation16_spill]] }
 0x504   : > { %s2545_s17 = sld [smem:[#allocation17_spill]]  ;;  %s2546_s11 = smov %s1854_s12 }
 0x505   : > { %s2547_s12 = smov %s1858_s13  ;;  %s2548_s13 = smov %s2020_s30 }
 0x506   : > { %s2549_s14 = smov %s1870_s16  ;;  %27 = sbr.rel (!%p25_p1) target bundleno = 16 (0x10), region = 115 }
 0x509   : > { %s2550_s16 = smov %s2544_s24 }
 0x50d   :  { %1343 = vsyncpa [#allocation7], 1 }
 0x50e   :  { %1345 = vsyncpa [#allocation7 + $0x1], 1 }
 0x50f   :  { %1346 = vsyncpa [#allocation8], 1 }
 0x510   :  { %1348 = vsyncpa [#allocation8 + $0x1], 1 }
 0x511   :  { %1349 = vsyncpa [#allocation11], 1 }
 0x512   :  { %1351 = vsyncpa [#allocation11 + $0x1], 1 }

</bundles_post_ra>
